<compile_context>
chip_gen: v7x
topology: tpu7x:2x2x1
jax: 0.10.0
libtpu: 0.0.40
codegen_flags: <defaults>
</compile_context>

<pallas_src>
import functools

import jax
import jax.numpy as jnp
from jax.experimental import pallas as pl
from jax.experimental.pallas import tpu as pltpu


def _opt_attention_kernel(x_ref, mask_ref,
                          wq_ref, bq_ref, wk_ref, bk_ref,
                          wv_ref, bv_ref, wo_ref, bo_ref,
                          *out_and_scratch,
                          group_size, head_dim, num_groups,
                          output_attentions, exp_dtype):
    if output_attentions:
        out_ref, attnw_ref, acc_ref = out_and_scratch
    else:
        out_ref, acc_ref = out_and_scratch
        attnw_ref = None

    hg = pl.program_id(1)                           # head-group index

    x = x_ref[0]                                    # (T, E), compute dtype
    cdt = x.dtype
    mask = mask_ref[0, 0].astype(jnp.float32)       # (T, T)

    # Fused per-group projections: (T, E) @ (E, G*hd), f32 accumulation.
    # `scaling` is already folded into wq / bq host-side.
    q = (jnp.dot(x, wq_ref[0], preferred_element_type=jnp.float32)
         + bq_ref[0]).astype(cdt)                   # (T, G*hd)
    k = (jnp.dot(x, wk_ref[0], preferred_element_type=jnp.float32)
         + bk_ref[0]).astype(cdt)                   # (T, G*hd)
    v = (jnp.dot(x, wv_ref[0], preferred_element_type=jnp.float32)
         + bv_ref[0]).astype(cdt)                   # (T, G*hd)

    fmin = jnp.finfo(jnp.float32).min
    ctx_parts = []
    for g in range(group_size):                     # small static unroll (G<=4)
        sl = slice(g * head_dim, (g + 1) * head_dim)
        qh, kh, vh = q[:, sl], k[:, sl], v[:, sl]   # (T, hd)

        # scores = q @ k^T : contract head_dim of both operands (no transpose).
        scores = jax.lax.dot_general(
            qh, kh, dimension_numbers=(((1,), (1,)), ((), ())),
            preferred_element_type=jnp.float32)     # (T, T) f32
        scores = jnp.maximum(scores + mask, fmin)   # torch.max(w, finfo.min)

        # softmax over src_len; exponent optionally in bf16 (v6e/v7x EUP),
        # max / sum / normalisation stay f32.
        m = jnp.max(scores, axis=-1, keepdims=True)
        e = jnp.exp((scores - m).astype(exp_dtype)).astype(jnp.float32)
        s = jnp.sum(e, axis=-1, keepdims=True)
        if output_attentions:
            probs = e / s                           # exact: rows sum to 1
            attnw_ref[0, g] = probs.astype(attnw_ref.dtype)
        else:
            probs = e * pl.reciprocal(s, approx=True)   # EUP slot, off VALU path

        # TODO(synk): attention dropout (p=0.0 by default, training-only) omitted.
        ctx_parts.append(jnp.dot(probs.astype(cdt), vh,
                                 preferred_element_type=jnp.float32))  # (T, hd)

    ctx = jnp.concatenate(ctx_parts, axis=-1).astype(cdt)    # (T, G*hd)
    # Fused group output projection: contraction depth G*hd.
    contrib = jnp.dot(ctx, wo_ref[0], preferred_element_type=jnp.float32)  # (T, E)

    @pl.when(hg == 0)
    def _init():
        acc_ref[...] = jnp.broadcast_to(
            bo_ref[...].astype(jnp.float32), acc_ref.shape)

    acc_ref[...] += contrib

    @pl.when(hg == num_groups - 1)
    def _finalize():
        out_ref[0] = acc_ref[...].astype(out_ref.dtype)


def _pick_group_size(num_heads, requested):
    g = max(1, min(int(requested), num_heads))
    while num_heads % g:
        g -= 1
    return g


def _prepare_params(params, num_heads, group_size, scaling, compute_dtype):
    """One-time host-side weight layout transform (group-major).

        wq/wk/wv: (E, E) -> (H/G, E, G*hd)   (scaling folded into wq/bq)
        wo:       (E, E) -> (H/G, G*hd, E)
        bq/bk/bv: (E,)   -> (H/G, 1, G*hd)   f32
        bo:       (E,)   -> (1, E)           f32
    """
    E = params["wq"].shape[0]
    hd = E // num_heads
    ng = num_heads // group_size
    gw = group_size * hd

    def group_cols(w):                      # (E, E) -> (H/G, E, G*hd)
        return w.reshape(E, ng, gw).transpose(1, 0, 2)

    wq = group_cols(params["wq"] * scaling).astype(compute_dtype)
    wk = group_cols(params["wk"]).astype(compute_dtype)
    wv = group_cols(params["wv"]).astype(compute_dtype)
    wo = params["wo"].reshape(ng, gw, E).astype(compute_dtype)
    bq = (params["bq"] * scaling).astype(jnp.float32).reshape(ng, 1, gw)
    bk = params["bk"].astype(jnp.float32).reshape(ng, 1, gw)
    bv = params["bv"].astype(jnp.float32).reshape(ng, 1, gw)
    bo = params["bo"].astype(jnp.float32).reshape(1, E)
    return wq, bq, wk, bk, wv, bv, wo, bo


def _vmem_limit_bytes(T, E, G, hd, compute_bytes, mask_bytes, out_bytes,
                      attnw_bytes, output_attentions):
    gw = G * hd
    blocks = (T * E * compute_bytes                        # x block
              + T * T * mask_bytes                         # mask block
              + 3 * (E * gw * compute_bytes + gw * 4)      # wq/wk/wv + biases
              + gw * E * compute_bytes + E * 4             # wo + bo
              + T * E * out_bytes)                         # out block
    if output_attentions:
        blocks += G * T * T * attnw_bytes                  # attn-weights block
    scratch = T * E * 4                                    # f32 accumulator
    # In-kernel temporaries: q/k/v/ctx (T, G*hd) in f32 + compute dtype, plus
    # ~4 live (T, T) f32 softmax temporaries (scores, shifted, exp, probs).
    temps = 4 * T * gw * (4 + compute_bytes) + 4 * T * T * 4
    total = 2 * blocks + scratch + temps                   # double-buffered I/O
    try:
        physical = int(pltpu.get_tpu_info().vmem_capacity_bytes)
    except Exception:
        physical = 64 * 2 ** 20
    cap = int(physical * 0.8)        # headroom for Mosaic internal scratch
    return int(min(max(int(1.5 * total), 8 * 2 ** 20), cap))


def opt_attention(hidden_states, attention_mask, params, *, num_heads,
                  output_attentions=True, head_group_size=4,
                  attn_weights_dtype=jnp.float32):
    """OPTAttention self-attention forward. Returns (attn_output, attn_weights|None).

    Pass bf16 hidden_states on v6e/v7x for full MXU rate and bf16 softmax exp;
    use head_group_size=2 on v5e (128-wide MXU), 4 on v6e/v7x.
    """
    B, T, E = hidden_states.shape
    head_dim = E // num_heads
    assert head_dim * num_heads == E
    G = _pick_group_size(num_heads, head_group_size)
    num_groups = num_heads // G
    gw = G * head_dim
    scaling = head_dim ** (-0.5)
    compute_dtype = hidden_states.dtype
    exp_dtype = jnp.bfloat16 if compute_dtype == jnp.bfloat16 else jnp.float32

    wq, bq, wk, bk, wv, bv, wo, bo = _prepare_params(
        params, num_heads, G, scaling, compute_dtype)

    kernel = functools.partial(
        _opt_attention_kernel,
        group_size=G, head_dim=head_dim, num_groups=num_groups,
        output_attentions=output_attentions, exp_dtype=exp_dtype)

    # Support broadcast (1, 1, T, T) masks without indexing out of bounds.
    mask_B = attention_mask.shape[0]
    if mask_B == 1:
        mask_idx = lambda b, h: (0, 0, 0, 0)
    else:
        assert mask_B == B, "attention_mask batch dim must be 1 or B"
        mask_idx = lambda b, h: (b, 0, 0, 0)

    w_spec = pl.BlockSpec((1, E, gw), lambda b, h: (h, 0, 0))
    b_spec = pl.BlockSpec((1, 1, gw), lambda b, h: (h, 0, 0))
    in_specs = [
        pl.BlockSpec((1, T, E), lambda b, h: (b, 0, 0)),   # x (resident over h)
        pl.BlockSpec((1, 1, T, T), mask_idx),              # mask (resident over h)
        w_spec, b_spec,                                    # q_proj (per group)
        w_spec, b_spec,                                    # k_proj
        w_spec, b_spec,                                    # v_proj
        pl.BlockSpec((1, gw, E), lambda b, h: (h, 0, 0)),  # out_proj rows of group h
        pl.BlockSpec((1, E), lambda b, h: (0, 0)),         # out_proj bias
    ]

    out_shapes = [jax.ShapeDtypeStruct((B, T, E), hidden_states.dtype)]
    out_specs = [pl.BlockSpec((1, T, E), lambda b, h: (b, 0, 0))]
    if output_attentions:
        out_shapes.append(
            jax.ShapeDtypeStruct((B, num_heads, T, T), attn_weights_dtype))
        out_specs.append(pl.BlockSpec((1, G, T, T), lambda b, h: (b, h, 0, 0)))

    vmem_limit = _vmem_limit_bytes(
        T, E, G, head_dim,
        jnp.dtype(compute_dtype).itemsize,
        jnp.dtype(attention_mask.dtype).itemsize,
        jnp.dtype(hidden_states.dtype).itemsize,
        jnp.dtype(attn_weights_dtype).itemsize,
        output_attentions)

    results = pl.pallas_call(
        kernel,
        out_shape=tuple(out_shapes),
        grid_spec=pltpu.PrefetchScalarGridSpec(
            num_scalar_prefetch=0,
            grid=(B, num_groups),
            in_specs=in_specs,
            out_specs=out_specs,
            scratch_shapes=[pltpu.VMEM((T, E), jnp.float32)],
        ),
        compiler_params=pltpu.CompilerParams(
            dimension_semantics=("parallel", "arbitrary"),
            vmem_limit_bytes=vmem_limit,
        ),
    )(hidden_states, attention_mask,
      wq, bq, wk, bk, wv, bv, wo, bo)

    if output_attentions:
        out, attnw = results
    else:
        (out,) = results
        attnw = None
    return out, attnw


def _reference(hidden_states, attention_mask, params, *, num_heads):
    """Pure-JAX replica of the PyTorch forward for verification."""
    B, T, E = hidden_states.shape
    hd = E // num_heads
    scaling = hd ** (-0.5)

    def lin(x, w, b):          # w is (in, out)
        return x @ w + b

    q = lin(hidden_states, params["wq"], params["bq"]) * scaling
    k = lin(hidden_states, params["wk"], params["bk"])
    v = lin(hidden_states, params["wv"], params["bv"])

    def shape(t):
        return t.reshape(B, T, num_heads, hd).transpose(0, 2, 1, 3)

    q, k, v = shape(q), shape(k), shape(v)                          # (B, H, T, hd)
    w = jnp.einsum("bhqd,bhkd->bhqk", q, k) + attention_mask        # (B, H, T, T)
    w = jnp.maximum(w, jnp.finfo(jnp.float32).min)
    w = jax.nn.softmax(w, axis=-1)
    ctx = jnp.einsum("bhqk,bhkd->bhqd", w, v)                       # (B, H, T, hd)
    ctx = ctx.transpose(0, 2, 1, 3).reshape(B, T, E)
    out = lin(ctx, params["wo"], params["bo"])
    return out, w


if __name__ == "__main__":
    B, T, E, H = 2, 8, 32, 4

    key = jax.random.PRNGKey(0)
    ks = jax.random.split(key, 10)

    # Deterministic synthetic parameters; weights stored as (in, out).
    params = {
        "wq": jax.random.normal(ks[0], (E, E), jnp.float32) * 0.05,
        "bq": jax.random.normal(ks[1], (E,), jnp.float32) * 0.05,
        "wk": jax.random.normal(ks[2], (E, E), jnp.float32) * 0.05,
        "bk": jax.random.normal(ks[3], (E,), jnp.float32) * 0.05,
        "wv": jax.random.normal(ks[4], (E, E), jnp.float32) * 0.05,
        "bv": jax.random.normal(ks[5], (E,), jnp.float32) * 0.05,
        "wo": jax.random.normal(ks[6], (E, E), jnp.float32) * 0.05,
        "bo": jax.random.normal(ks[7], (E,), jnp.float32) * 0.05,
    }

    hidden_states = jax.random.normal(ks[8], (B, T, E), jnp.float32)

    # Causal additive mask, shape (B, 1, T, T) like the PyTorch module expects.
    causal = jnp.triu(jnp.full((T, T), -1e9, jnp.float32), k=1)
    attention_mask = jnp.broadcast_to(causal, (B, 1, T, T))

    ref_out, ref_w = _reference(hidden_states, attention_mask, params,
                                num_heads=H)

    # 1) One group of 4 heads, attention weights returned (exact softmax divide).
    out1, w1 = opt_attention(hidden_states, attention_mask, params,
                             num_heads=H, output_attentions=True)
    jax.block_until_ready((out1, w1))
    assert jnp.allclose(out1, ref_out, rtol=2e-3, atol=2e-3)
    assert jnp.allclose(w1, ref_w, rtol=2e-3, atol=2e-3)

    # 2) Two groups of 2 heads (exercises the cross-group accumulator), fast
    #    path without the O(B*H*T^2) attention-weights writeback.
    out2, w2 = opt_attention(hidden_states, attention_mask, params,
                             num_heads=H, output_attentions=False,
                             head_group_size=2)
    jax.block_until_ready(out2)
    assert w2 is None
    assert jnp.allclose(out2, ref_out, rtol=2e-3, atol=2e-3)

    # 3) Two groups + attention weights + broadcast (1, 1, T, T) mask.
    out3, w3 = opt_attention(hidden_states, attention_mask[:1], params,
                             num_heads=H, output_attentions=True,
                             head_group_size=2)
    jax.block_until_ready((out3, w3))
    assert jnp.allclose(out3, ref_out, rtol=2e-3, atol=2e-3)
    assert jnp.allclose(w3, ref_w, rtol=2e-3, atol=2e-3)

    print("KERNEL_OK")
</pallas_src>

<mosaic_0001>
module attributes {stable_mosaic.version = 11 : i64} {
  func.func @_opt_attention_kernel(%arg0: i32, %arg1: i32, %arg2: memref<1x8x32xf32, #tpu.memory_space<vmem>>, %arg3: memref<1x1x8x8xf32, #tpu.memory_space<vmem>>, %arg4: memref<1x32x32xf32, #tpu.memory_space<vmem>>, %arg5: memref<1x1x32xf32, #tpu.memory_space<vmem>>, %arg6: memref<1x32x32xf32, #tpu.memory_space<vmem>>, %arg7: memref<1x1x32xf32, #tpu.memory_space<vmem>>, %arg8: memref<1x32x32xf32, #tpu.memory_space<vmem>>, %arg9: memref<1x1x32xf32, #tpu.memory_space<vmem>>, %arg10: memref<1x32x32xf32, #tpu.memory_space<vmem>>, %arg11: memref<1x32xf32, #tpu.memory_space<vmem>>, %arg12: memref<1x8x32xf32, #tpu.memory_space<vmem>>, %arg13: memref<1x4x8x8xf32, #tpu.memory_space<vmem>>, %arg14: memref<8x32xf32, #tpu.memory_space<vmem>>) attributes {dimension_semantics = [#tpu.dimension_semantics<parallel>, #tpu.dimension_semantics<arbitrary>], iteration_bounds = array<i64: 2, 1>, scalar_prefetch = 0 : i64, scratch_operands = 1 : i64, tpu.core_type = #tpu.core_type<tc>, window_params = [{transform_indices = @transform_0, window_bounds = array<i64: 1, 8, 32>}, {transform_indices = @transform_1, window_bounds = array<i64: 1, 1, 8, 8>}, {transform_indices = @transform_2, window_bounds = array<i64: 1, 32, 32>}, {transform_indices = @transform_3, window_bounds = array<i64: 1, 1, 32>}, {transform_indices = @transform_4, window_bounds = array<i64: 1, 32, 32>}, {transform_indices = @transform_5, window_bounds = array<i64: 1, 1, 32>}, {transform_indices = @transform_6, window_bounds = array<i64: 1, 32, 32>}, {transform_indices = @transform_7, window_bounds = array<i64: 1, 1, 32>}, {transform_indices = @transform_8, window_bounds = array<i64: 1, 32, 32>}, {pipeline_mode = #tpu.pipeline_mode<synchronous>, transform_indices = @transform_9, window_bounds = array<i64: 1, 32>}, {transform_indices = @transform_10, window_bounds = array<i64: 1, 8, 32>}, {transform_indices = @transform_11, window_bounds = array<i64: 1, 4, 8, 8>}]} {
    %c0 = arith.constant 0 : index
    %c0_0 = arith.constant 0 : index
    %c0_1 = arith.constant 0 : index
    %0 = vector.load %arg2[%c0, %c0_0, %c0_1] : memref<1x8x32xf32, #tpu.memory_space<vmem>>, vector<1x8x32xf32>
    %1 = vector.shape_cast %0 : vector<1x8x32xf32> to vector<8x32xf32>
    %c0_2 = arith.constant 0 : index
    %c0_3 = arith.constant 0 : index
    %c0_4 = arith.constant 0 : index
    %c0_5 = arith.constant 0 : index
    %2 = vector.load %arg3[%c0_2, %c0_3, %c0_4, %c0_5] : memref<1x1x8x8xf32, #tpu.memory_space<vmem>>, vector<1x1x8x8xf32>
    %3 = vector.shape_cast %2 : vector<1x1x8x8xf32> to vector<8x8xf32>
    %c0_6 = arith.constant 0 : index
    %c0_7 = arith.constant 0 : index
    %c0_8 = arith.constant 0 : index
    %4 = vector.load %arg4[%c0_6, %c0_7, %c0_8] : memref<1x32x32xf32, #tpu.memory_space<vmem>>, vector<1x32x32xf32>
    %5 = vector.shape_cast %4 : vector<1x32x32xf32> to vector<32x32xf32>
    %cst = arith.constant dense<0.000000e+00> : vector<8x32xf32>
    %6 = tpu.matmul %1, %5, %cst {dimension_numbers = #tpu.dot_dimension_numbers<[1], [0], [0], [1], [0, 0, 1, 1], [], []>} : vector<8x32xf32>, vector<32x32xf32>, vector<8x32xf32> -> vector<8x32xf32>
    %c0_9 = arith.constant 0 : index
    %c0_10 = arith.constant 0 : index
    %c0_11 = arith.constant 0 : index
    %7 = vector.load %arg5[%c0_9, %c0_10, %c0_11] : memref<1x1x32xf32, #tpu.memory_space<vmem>>, vector<1x1x32xf32>
    %8 = vector.shape_cast %7 : vector<1x1x32xf32> to vector<1x32xf32>
    %9 = vector.broadcast %8 : vector<1x32xf32> to vector<8x32xf32>
    %10 = arith.addf %6, %9 : vector<8x32xf32>
    %c0_12 = arith.constant 0 : index
    %c0_13 = arith.constant 0 : index
    %c0_14 = arith.constant 0 : index
    %11 = vector.load %arg6[%c0_12, %c0_13, %c0_14] : memref<1x32x32xf32, #tpu.memory_space<vmem>>, vector<1x32x32xf32>
    %12 = vector.shape_cast %11 : vector<1x32x32xf32> to vector<32x32xf32>
    %cst_15 = arith.constant dense<0.000000e+00> : vector<8x32xf32>
    %13 = tpu.matmul %1, %12, %cst_15 {dimension_numbers = #tpu.dot_dimension_numbers<[1], [0], [0], [1], [0, 0, 1, 1], [], []>} : vector<8x32xf32>, vector<32x32xf32>, vector<8x32xf32> -> vector<8x32xf32>
    %c0_16 = arith.constant 0 : index
    %c0_17 = arith.constant 0 : index
    %c0_18 = arith.constant 0 : index
    %14 = vector.load %arg7[%c0_16, %c0_17, %c0_18] : memref<1x1x32xf32, #tpu.memory_space<vmem>>, vector<1x1x32xf32>
    %15 = vector.shape_cast %14 : vector<1x1x32xf32> to vector<1x32xf32>
    %16 = vector.broadcast %15 : vector<1x32xf32> to vector<8x32xf32>
    %17 = arith.addf %13, %16 : vector<8x32xf32>
    %c0_19 = arith.constant 0 : index
    %c0_20 = arith.constant 0 : index
    %c0_21 = arith.constant 0 : index
    %18 = vector.load %arg8[%c0_19, %c0_20, %c0_21] : memref<1x32x32xf32, #tpu.memory_space<vmem>>, vector<1x32x32xf32>
    %19 = vector.shape_cast %18 : vector<1x32x32xf32> to vector<32x32xf32>
    %cst_22 = arith.constant dense<0.000000e+00> : vector<8x32xf32>
    %20 = tpu.matmul %1, %19, %cst_22 {dimension_numbers = #tpu.dot_dimension_numbers<[1], [0], [0], [1], [0, 0, 1, 1], [], []>} : vector<8x32xf32>, vector<32x32xf32>, vector<8x32xf32> -> vector<8x32xf32>
    %c0_23 = arith.constant 0 : index
    %c0_24 = arith.constant 0 : index
    %c0_25 = arith.constant 0 : index
    %21 = vector.load %arg9[%c0_23, %c0_24, %c0_25] : memref<1x1x32xf32, #tpu.memory_space<vmem>>, vector<1x1x32xf32>
    %22 = vector.shape_cast %21 : vector<1x1x32xf32> to vector<1x32xf32>
    %23 = vector.broadcast %22 : vector<1x32xf32> to vector<8x32xf32>
    %24 = arith.addf %20, %23 : vector<8x32xf32>
    %25 = vector.extract_strided_slice %10 {offsets = [0, 0], sizes = [8, 8], strides = [1, 1]} : vector<8x32xf32> to vector<8x8xf32>
    %26 = vector.extract_strided_slice %17 {offsets = [0, 0], sizes = [8, 8], strides = [1, 1]} : vector<8x32xf32> to vector<8x8xf32>
    %27 = vector.extract_strided_slice %24 {offsets = [0, 0], sizes = [8, 8], strides = [1, 1]} : vector<8x32xf32> to vector<8x8xf32>
    %cst_26 = arith.constant dense<0.000000e+00> : vector<8x8xf32>
    %28 = tpu.matmul %25, %26, %cst_26 {dimension_numbers = #tpu.dot_dimension_numbers<[1], [1], [0], [0], [0, 0, 1, 0], [], []>} : vector<8x8xf32>, vector<8x8xf32>, vector<8x8xf32> -> vector<8x8xf32>
    %29 = arith.addf %28, %3 : vector<8x8xf32>
    %cst_27 = arith.constant -3.40282347E+38 : f32
    %30 = vector.broadcast %cst_27 : f32 to vector<8x8xf32>
    %31 = arith.maximumf %29, %30 : vector<8x8xf32>
    %cst_28 = arith.constant dense<0xFF800000> : vector<8xf32>
    %32 = vector.multi_reduction <maximumf>, %31, %cst_28 [1] : vector<8x8xf32> to vector<8xf32>
    %33 = vector.shape_cast %32 : vector<8xf32> to vector<8x1xf32>
    %34 = vector.broadcast %33 : vector<8x1xf32> to vector<8x8xf32>
    %35 = arith.subf %31, %34 : vector<8x8xf32>
    %36 = math.exp %35 : vector<8x8xf32>
    %cst_29 = arith.constant dense<0.000000e+00> : vector<8xf32>
    %37 = vector.multi_reduction <add>, %36, %cst_29 [1] : vector<8x8xf32> to vector<8xf32>
    %38 = vector.shape_cast %37 : vector<8xf32> to vector<8x1xf32>
    %39 = vector.broadcast %38 : vector<8x1xf32> to vector<8x8xf32>
    %40 = arith.divf %36, %39 : vector<8x8xf32>
    %c0_30 = arith.constant 0 : index
    %c0_31 = arith.constant 0 : index
    %c0_32 = arith.constant 0 : index
    %c0_33 = arith.constant 0 : index
    %41 = vector.load %arg13[%c0_30, %c0_31, %c0_32, %c0_33] : memref<1x4x8x8xf32, #tpu.memory_space<vmem>>, vector<1x1x8x8xf32>
    %42 = vector.shape_cast %41 : vector<1x1x8x8xf32> to vector<8x8xf32>
    %43 = vector.shape_cast %40 : vector<8x8xf32> to vector<1x1x8x8xf32>
    tpu.vector_store %arg13[%c0_30, %c0_31, %c0_32, %c0_33], %43 {strides = array<i32>} : memref<1x4x8x8xf32, #tpu.memory_space<vmem>>, vector<1x1x8x8xf32>,
    %cst_34 = arith.constant dense<0.000000e+00> : vector<8x8xf32>
    %44 = tpu.matmul %40, %27, %cst_34 {dimension_numbers = #tpu.dot_dimension_numbers<[1], [0], [0], [1], [0, 0, 1, 1], [], []>} : vector<8x8xf32>, vector<8x8xf32>, vector<8x8xf32> -> vector<8x8xf32>
    %45 = vector.extract_strided_slice %10 {offsets = [0, 8], sizes = [8, 8], strides = [1, 1]} : vector<8x32xf32> to vector<8x8xf32>
    %46 = vector.extract_strided_slice %17 {offsets = [0, 8], sizes = [8, 8], strides = [1, 1]} : vector<8x32xf32> to vector<8x8xf32>
    %47 = vector.extract_strided_slice %24 {offsets = [0, 8], sizes = [8, 8], strides = [1, 1]} : vector<8x32xf32> to vector<8x8xf32>
    %cst_35 = arith.constant dense<0.000000e+00> : vector<8x8xf32>
    %48 = tpu.matmul %45, %46, %cst_35 {dimension_numbers = #tpu.dot_dimension_numbers<[1], [1], [0], [0], [0, 0, 1, 0], [], []>} : vector<8x8xf32>, vector<8x8xf32>, vector<8x8xf32> -> vector<8x8xf32>
    %49 = arith.addf %48, %3 : vector<8x8xf32>
    %cst_36 = arith.constant -3.40282347E+38 : f32
    %50 = vector.broadcast %cst_36 : f32 to vector<8x8xf32>
    %51 = arith.maximumf %49, %50 : vector<8x8xf32>
    %cst_37 = arith.constant dense<0xFF800000> : vector<8xf32>
    %52 = vector.multi_reduction <maximumf>, %51, %cst_37 [1] : vector<8x8xf32> to vector<8xf32>
    %53 = vector.shape_cast %52 : vector<8xf32> to vector<8x1xf32>
    %54 = vector.broadcast %53 : vector<8x1xf32> to vector<8x8xf32>
    %55 = arith.subf %51, %54 : vector<8x8xf32>
    %56 = math.exp %55 : vector<8x8xf32>
    %cst_38 = arith.constant dense<0.000000e+00> : vector<8xf32>
    %57 = vector.multi_reduction <add>, %56, %cst_38 [1] : vector<8x8xf32> to vector<8xf32>
    %58 = vector.shape_cast %57 : vector<8xf32> to vector<8x1xf32>
    %59 = vector.broadcast %58 : vector<8x1xf32> to vector<8x8xf32>
    %60 = arith.divf %56, %59 : vector<8x8xf32>
    %c0_39 = arith.constant 0 : index
    %c1 = arith.constant 1 : index
    %c0_40 = arith.constant 0 : index
    %c0_41 = arith.constant 0 : index
    %61 = vector.load %arg13[%c0_39, %c1, %c0_40, %c0_41] : memref<1x4x8x8xf32, #tpu.memory_space<vmem>>, vector<1x1x8x8xf32>
    %62 = vector.shape_cast %61 : vector<1x1x8x8xf32> to vector<8x8xf32>
    %63 = vector.shape_cast %60 : vector<8x8xf32> to vector<1x1x8x8xf32>
    tpu.vector_store %arg13[%c0_39, %c1, %c0_40, %c0_41], %63 {strides = array<i32>} : memref<1x4x8x8xf32, #tpu.memory_space<vmem>>, vector<1x1x8x8xf32>,
    %cst_42 = arith.constant dense<0.000000e+00> : vector<8x8xf32>
    %64 = tpu.matmul %60, %47, %cst_42 {dimension_numbers = #tpu.dot_dimension_numbers<[1], [0], [0], [1], [0, 0, 1, 1], [], []>} : vector<8x8xf32>, vector<8x8xf32>, vector<8x8xf32> -> vector<8x8xf32>
    %65 = vector.extract_strided_slice %10 {offsets = [0, 16], sizes = [8, 8], strides = [1, 1]} : vector<8x32xf32> to vector<8x8xf32>
    %66 = vector.extract_strided_slice %17 {offsets = [0, 16], sizes = [8, 8], strides = [1, 1]} : vector<8x32xf32> to vector<8x8xf32>
    %67 = vector.extract_strided_slice %24 {offsets = [0, 16], sizes = [8, 8], strides = [1, 1]} : vector<8x32xf32> to vector<8x8xf32>
    %cst_43 = arith.constant dense<0.000000e+00> : vector<8x8xf32>
    %68 = tpu.matmul %65, %66, %cst_43 {dimension_numbers = #tpu.dot_dimension_numbers<[1], [1], [0], [0], [0, 0, 1, 0], [], []>} : vector<8x8xf32>, vector<8x8xf32>, vector<8x8xf32> -> vector<8x8xf32>
    %69 = arith.addf %68, %3 : vector<8x8xf32>
    %cst_44 = arith.constant -3.40282347E+38 : f32
    %70 = vector.broadcast %cst_44 : f32 to vector<8x8xf32>
    %71 = arith.maximumf %69, %70 : vector<8x8xf32>
    %cst_45 = arith.constant dense<0xFF800000> : vector<8xf32>
    %72 = vector.multi_reduction <maximumf>, %71, %cst_45 [1] : vector<8x8xf32> to vector<8xf32>
    %73 = vector.shape_cast %72 : vector<8xf32> to vector<8x1xf32>
    %74 = vector.broadcast %73 : vector<8x1xf32> to vector<8x8xf32>
    %75 = arith.subf %71, %74 : vector<8x8xf32>
    %76 = math.exp %75 : vector<8x8xf32>
    %cst_46 = arith.constant dense<0.000000e+00> : vector<8xf32>
    %77 = vector.multi_reduction <add>, %76, %cst_46 [1] : vector<8x8xf32> to vector<8xf32>
    %78 = vector.shape_cast %77 : vector<8xf32> to vector<8x1xf32>
    %79 = vector.broadcast %78 : vector<8x1xf32> to vector<8x8xf32>
    %80 = arith.divf %76, %79 : vector<8x8xf32>
    %c0_47 = arith.constant 0 : index
    %c2 = arith.constant 2 : index
    %c0_48 = arith.constant 0 : index
    %c0_49 = arith.constant 0 : index
    %81 = vector.load %arg13[%c0_47, %c2, %c0_48, %c0_49] : memref<1x4x8x8xf32, #tpu.memory_space<vmem>>, vector<1x1x8x8xf32>
    %82 = vector.shape_cast %81 : vector<1x1x8x8xf32> to vector<8x8xf32>
    %83 = vector.shape_cast %80 : vector<8x8xf32> to vector<1x1x8x8xf32>
    tpu.vector_store %arg13[%c0_47, %c2, %c0_48, %c0_49], %83 {strides = array<i32>} : memref<1x4x8x8xf32, #tpu.memory_space<vmem>>, vector<1x1x8x8xf32>,
    %cst_50 = arith.constant dense<0.000000e+00> : vector<8x8xf32>
    %84 = tpu.matmul %80, %67, %cst_50 {dimension_numbers = #tpu.dot_dimension_numbers<[1], [0], [0], [1], [0, 0, 1, 1], [], []>} : vector<8x8xf32>, vector<8x8xf32>, vector<8x8xf32> -> vector<8x8xf32>
    %85 = vector.extract_strided_slice %10 {offsets = [0, 24], sizes = [8, 8], strides = [1, 1]} : vector<8x32xf32> to vector<8x8xf32>
    %86 = vector.extract_strided_slice %17 {offsets = [0, 24], sizes = [8, 8], strides = [1, 1]} : vector<8x32xf32> to vector<8x8xf32>
    %87 = vector.extract_strided_slice %24 {offsets = [0, 24], sizes = [8, 8], strides = [1, 1]} : vector<8x32xf32> to vector<8x8xf32>
    %cst_51 = arith.constant dense<0.000000e+00> : vector<8x8xf32>
    %88 = tpu.matmul %85, %86, %cst_51 {dimension_numbers = #tpu.dot_dimension_numbers<[1], [1], [0], [0], [0, 0, 1, 0], [], []>} : vector<8x8xf32>, vector<8x8xf32>, vector<8x8xf32> -> vector<8x8xf32>
    %89 = arith.addf %88, %3 : vector<8x8xf32>
    %cst_52 = arith.constant -3.40282347E+38 : f32
    %90 = vector.broadcast %cst_52 : f32 to vector<8x8xf32>
    %91 = arith.maximumf %89, %90 : vector<8x8xf32>
    %cst_53 = arith.constant dense<0xFF800000> : vector<8xf32>
    %92 = vector.multi_reduction <maximumf>, %91, %cst_53 [1] : vector<8x8xf32> to vector<8xf32>
    %93 = vector.shape_cast %92 : vector<8xf32> to vector<8x1xf32>
    %94 = vector.broadcast %93 : vector<8x1xf32> to vector<8x8xf32>
    %95 = arith.subf %91, %94 : vector<8x8xf32>
    %96 = math.exp %95 : vector<8x8xf32>
    %cst_54 = arith.constant dense<0.000000e+00> : vector<8xf32>
    %97 = vector.multi_reduction <add>, %96, %cst_54 [1] : vector<8x8xf32> to vector<8xf32>
    %98 = vector.shape_cast %97 : vector<8xf32> to vector<8x1xf32>
    %99 = vector.broadcast %98 : vector<8x1xf32> to vector<8x8xf32>
    %100 = arith.divf %96, %99 : vector<8x8xf32>
    %c0_55 = arith.constant 0 : index
    %c3 = arith.constant 3 : index
    %c0_56 = arith.constant 0 : index
    %c0_57 = arith.constant 0 : index
    %101 = vector.load %arg13[%c0_55, %c3, %c0_56, %c0_57] : memref<1x4x8x8xf32, #tpu.memory_space<vmem>>, vector<1x1x8x8xf32>
    %102 = vector.shape_cast %101 : vector<1x1x8x8xf32> to vector<8x8xf32>
    %103 = vector.shape_cast %100 : vector<8x8xf32> to vector<1x1x8x8xf32>
    tpu.vector_store %arg13[%c0_55, %c3, %c0_56, %c0_57], %103 {strides = array<i32>} : memref<1x4x8x8xf32, #tpu.memory_space<vmem>>, vector<1x1x8x8xf32>,
    %cst_58 = arith.constant dense<0.000000e+00> : vector<8x8xf32>
    %104 = tpu.matmul %100, %87, %cst_58 {dimension_numbers = #tpu.dot_dimension_numbers<[1], [0], [0], [1], [0, 0, 1, 1], [], []>} : vector<8x8xf32>, vector<8x8xf32>, vector<8x8xf32> -> vector<8x8xf32>
    %105 = tpu.concatenate %44, %64, %84, %104 in 1 : vector<8x8xf32>, vector<8x8xf32>, vector<8x8xf32>, vector<8x8xf32> -> vector<8x32xf32>
    %c0_59 = arith.constant 0 : index
    %c0_60 = arith.constant 0 : index
    %c0_61 = arith.constant 0 : index
    %106 = vector.load %arg10[%c0_59, %c0_60, %c0_61] : memref<1x32x32xf32, #tpu.memory_space<vmem>>, vector<1x32x32xf32>
    %107 = vector.shape_cast %106 : vector<1x32x32xf32> to vector<32x32xf32>
    %cst_62 = arith.constant dense<0.000000e+00> : vector<8x32xf32>
    %108 = tpu.matmul %105, %107, %cst_62 {dimension_numbers = #tpu.dot_dimension_numbers<[1], [0], [0], [1], [0, 0, 1, 1], [], []>} : vector<8x32xf32>, vector<32x32xf32>, vector<8x32xf32> -> vector<8x32xf32>
    %c0_i32 = arith.constant 0 : i32
    %109 = arith.cmpi eq, %arg1, %c0_i32 : i32
    %110 = arith.extui %109 : i1 to i32
    %c0_i32_63 = arith.constant 0 : i32
    %111 = arith.cmpi ne, %110, %c0_i32_63 : i32
    scf.if %111 {
      %c0_70 = arith.constant 0 : index
      %c0_71 = arith.constant 0 : index
      %118 = vector.load %arg11[%c0_70, %c0_71] : memref<1x32xf32, #tpu.memory_space<vmem>>, vector<1x32xf32>
      %119 = vector.shape_cast %118 : vector<1x32xf32> to vector<1x32xf32>
      %120 = vector.broadcast %119 : vector<1x32xf32> to vector<8x32xf32>
      %c0_72 = arith.constant 0 : index
      %c0_73 = arith.constant 0 : index
      %121 = vector.load %arg14[%c0_72, %c0_73] : memref<8x32xf32, #tpu.memory_space<vmem>>, vector<8x32xf32>
      tpu.vector_store %arg14[%c0_72, %c0_73], %120 {strides = array<i32>} : memref<8x32xf32, #tpu.memory_space<vmem>>, vector<8x32xf32>,
    } else {
    }
    %c0_64 = arith.constant 0 : index
    %c0_65 = arith.constant 0 : index
    %112 = vector.load %arg14[%c0_64, %c0_65] : memref<8x32xf32, #tpu.memory_space<vmem>>, vector<8x32xf32>
    %113 = arith.addf %112, %108 : vector<8x32xf32>
    %c0_66 = arith.constant 0 : index
    %c0_67 = arith.constant 0 : index
    %114 = vector.load %arg14[%c0_66, %c0_67] : memref<8x32xf32, #tpu.memory_space<vmem>>, vector<8x32xf32>
    tpu.vector_store %arg14[%c0_66, %c0_67], %113 {strides = array<i32>} : memref<8x32xf32, #tpu.memory_space<vmem>>, vector<8x32xf32>,
    %c0_i32_68 = arith.constant 0 : i32
    %115 = arith.cmpi eq, %arg1, %c0_i32_68 : i32
    %116 = arith.extui %115 : i1 to i32
    %c0_i32_69 = arith.constant 0 : i32
    %117 = arith.cmpi ne, %116, %c0_i32_69 : i32
    scf.if %117 {
      %c0_70 = arith.constant 0 : index
      %c0_71 = arith.constant 0 : index
      %118 = vector.load %arg14[%c0_70, %c0_71] : memref<8x32xf32, #tpu.memory_space<vmem>>, vector<8x32xf32>
      %c0_72 = arith.constant 0 : index
      %c0_73 = arith.constant 0 : index
      %c0_74 = arith.constant 0 : index
      %119 = vector.load %arg12[%c0_72, %c0_73, %c0_74] : memref<1x8x32xf32, #tpu.memory_space<vmem>>, vector<1x8x32xf32>
      %120 = vector.shape_cast %119 : vector<1x8x32xf32> to vector<8x32xf32>
      %121 = vector.shape_cast %118 : vector<8x32xf32> to vector<1x8x32xf32>
      tpu.vector_store %arg12[%c0_72, %c0_73, %c0_74], %121 {strides = array<i32>} : memref<1x8x32xf32, #tpu.memory_space<vmem>>, vector<1x8x32xf32>,
    } else {
    }
    return
  }
  func.func @transform_0(%arg0: i32, %arg1: i32) -> (i32, i32, i32) {
    %c0_i32 = arith.constant 0 : i32
    %c0_i32_0 = arith.constant 0 : i32
    %c0_i32_1 = arith.constant 0 : i32
    return %arg0, %c0_i32, %c0_i32_0 : i32, i32, i32
  }
  func.func @transform_1(%arg0: i32, %arg1: i32) -> (i32, i32, i32, i32) {
    %c0_i32 = arith.constant 0 : i32
    %c0_i32_0 = arith.constant 0 : i32
    %c0_i32_1 = arith.constant 0 : i32
    %c0_i32_2 = arith.constant 0 : i32
    return %arg0, %c0_i32, %c0_i32_0, %c0_i32_1 : i32, i32, i32, i32
  }
  func.func @transform_2(%arg0: i32, %arg1: i32) -> (i32, i32, i32) {
    %c0_i32 = arith.constant 0 : i32
    %c0_i32_0 = arith.constant 0 : i32
    %c0_i32_1 = arith.constant 0 : i32
    return %arg1, %c0_i32, %c0_i32_0 : i32, i32, i32
  }
  func.func @transform_3(%arg0: i32, %arg1: i32) -> (i32, i32, i32) {
    %c0_i32 = arith.constant 0 : i32
    %c0_i32_0 = arith.constant 0 : i32
    %c0_i32_1 = arith.constant 0 : i32
    return %arg1, %c0_i32, %c0_i32_0 : i32, i32, i32
  }
  func.func @transform_4(%arg0: i32, %arg1: i32) -> (i32, i32, i32) {
    %c0_i32 = arith.constant 0 : i32
    %c0_i32_0 = arith.constant 0 : i32
    %c0_i32_1 = arith.constant 0 : i32
    return %arg1, %c0_i32, %c0_i32_0 : i32, i32, i32
  }
  func.func @transform_5(%arg0: i32, %arg1: i32) -> (i32, i32, i32) {
    %c0_i32 = arith.constant 0 : i32
    %c0_i32_0 = arith.constant 0 : i32
    %c0_i32_1 = arith.constant 0 : i32
    return %arg1, %c0_i32, %c0_i32_0 : i32, i32, i32
  }
  func.func @transform_6(%arg0: i32, %arg1: i32) -> (i32, i32, i32) {
    %c0_i32 = arith.constant 0 : i32
    %c0_i32_0 = arith.constant 0 : i32
    %c0_i32_1 = arith.constant 0 : i32
    return %arg1, %c0_i32, %c0_i32_0 : i32, i32, i32
  }
  func.func @transform_7(%arg0: i32, %arg1: i32) -> (i32, i32, i32) {
    %c0_i32 = arith.constant 0 : i32
    %c0_i32_0 = arith.constant 0 : i32
    %c0_i32_1 = arith.constant 0 : i32
    return %arg1, %c0_i32, %c0_i32_0 : i32, i32, i32
  }
  func.func @transform_8(%arg0: i32, %arg1: i32) -> (i32, i32, i32) {
    %c0_i32 = arith.constant 0 : i32
    %c0_i32_0 = arith.constant 0 : i32
    %c0_i32_1 = arith.constant 0 : i32
    return %arg1, %c0_i32, %c0_i32_0 : i32, i32, i32
  }
  func.func @transform_9(%arg0: i32, %arg1: i32) -> (i32, i32) {
    %c0_i32 = arith.constant 0 : i32
    %c0_i32_0 = arith.constant 0 : i32
    %c0_i32_1 = arith.constant 0 : i32
    return %c0_i32, %c0_i32_0 : i32, i32
  }
  func.func @transform_10(%arg0: i32, %arg1: i32) -> (i32, i32, i32) {
    %c0_i32 = arith.constant 0 : i32
    %c0_i32_0 = arith.constant 0 : i32
    %c0_i32_1 = arith.constant 0 : i32
    return %arg0, %c0_i32, %c0_i32_0 : i32, i32, i32
  }
  func.func @transform_11(%arg0: i32, %arg1: i32) -> (i32, i32, i32, i32) {
    %c0_i32 = arith.constant 0 : i32
    %c0_i32_0 = arith.constant 0 : i32
    %c0_i32_1 = arith.constant 0 : i32
    return %arg0, %arg1, %c0_i32, %c0_i32_0 : i32, i32, i32, i32
  }
}

</mosaic_0001>

<bundles_post_ra>
// kernel: tpu_custom_call.1
= control target key start
LH: loop header
LB: loop body
LE: loop exit
PB: predicated region body
PF: predicated region fallthrough
CT: control target
= control target key end

     0   :  { %s3101_s0 = inlined_call_operand.hbm [shape: f32[2,8,32], index: 0, kind: input, shape index: {}]   ;;  %s3102_s1 = inlined_call_operand.hbm [shape: f32[2,1,8,8], index: 1, kind: input, shape index: {}]   ;;  %s3103_s2 = inlined_call_operand.hbm [shape: f32[1,32,32], index: 2, kind: input, shape index: {}]   ;;  %s3104_s3 = inlined_call_operand.vmem [shape: f32[1,1,32], index: 3, kind: input, shape index: {}]   ;;  %s3105_s4 = inlined_call_operand.hbm [shape: f32[1,32,32], index: 4, kind: input, shape index: {}]   ;;  %s3106_s5 = inlined_call_operand.vmem [shape: f32[1,1,32], index: 5, kind: input, shape index: {}]   ;;  %s3107_s6 = inlined_call_operand.hbm [shape: f32[1,32,32], index: 6, kind: input, shape index: {}]   ;;  %s3108_s7 = inlined_call_operand.vmem [shape: f32[1,1,32], index: 7, kind: input, shape index: {}]   ;;  %s3109_s8 = inlined_call_operand.hbm [shape: f32[1,32,32], index: 8, kind: input, shape index: {}]   ;;  %s3110_s9 = inlined_call_operand.vmem [shape: f32[1,32], index: 9, kind: input, shape index: {}]   ;;  %s3111_s10 = inlined_call_operand.hbm [shape: f32[2,8,32], index: 10, kind: output, shape index: {0}]   ;;  %s3112_s11 = inlined_call_operand.hbm [shape: f32[2,4,8,8], index: 11, kind: output, shape index: {1}]  }
   0x1   :  { %3121 = sst [smem:[#allocation26_spill]] %s3103_s2 }
   0x2   :  { %3122 = sst [smem:[#allocation27_spill]] %s3105_s4 }
   0x3   :  { %3123 = sst [smem:[#allocation28_spill]] %s3107_s6 }
   0x4   :  { %3124 = sst [smem:[#allocation29_spill]] %s3108_s7 }
   0x5   :  { %3125 = sst [smem:[#allocation30_spill]] %s3109_s8 }
   0x6   :  { %3126 = sst [smem:[#allocation31_spill]] %s3110_s9 }
   0x7   :  { %3127 = sst [smem:[#allocation32_spill]] %s3111_s10 }
   0x8   :  { %3128 = sst [smem:[#allocation33_spill]] %s3112_s11 }
   0x9   :  { %17 = vsyncpa [#allocation4], 0 }
   0xa   :  { %19 = vsyncpa [#allocation4 + $0x1], 0 }
   0xb   :  { %20 = vsyncpa [#allocation7], 0 }
   0xc   :  { %22 = vsyncpa [#allocation7 + $0x1], 0 }
   0xd   :  { %23 = vsyncpa [#allocation10], 0 }
   0xe   :  { %24 = vsyncpa [#allocation13], 0 }
   0xf   :  { %25 = vsyncpa [#allocation5], 0 }
  0x10   :  { %27 = vsyncpa [#allocation5 + $0x1], 0 }
  0x11   :  { %28 = vsyncpa [#allocation16], 0 }
  0x12   :  { %30 = vsyncpa [#allocation16 + $0x1], 0  ;;  %s2607_s17 = smov 0   ;;  %s2609_s18 = smov 0  }
  0x13   :  { %s2611_s19 = smov 0   ;;  %s2613_s20 = smov 0  }
  0x14   :  { %s2615_s21 = smov 0   ;;  %s2617_s22 = smov 0  }
  0x15 LB: > { %3129 = sst [smem:[#allocation24_spill]] %s2517_s20  ;;  %s2638_s23 = sadd.s32 4294967295, %s2525_s22   ;;  %s2525_s22 = sphi %s2617_s22, %s36_s22   ;;  %s2521_s21 = sphi %s2615_s21, %s3165_s21   ;;  %s2517_s20 = sphi %s2613_s20, %s3164_s20   ;;  %s2513_s19 = sphi %s2611_s19, %s3163_s19   ;;  %s2509_s18 = sphi %s2609_s18, %s3162_s18   ;;  %s2505_s17 = sphi %s2607_s17, %s3161_s17  }
  0x16   : > { %p1885_p0 = scmp.ge.s32.totalorder %s2525_s22, 1  ;;  %p3116_p1 = scmp.eq.s32.totalorder %s2638_s23, 0 }
  0x17   : > { %p362_p2 = scmp.lt.s32.totalorder %s2525_s22, 3  ;;  %s2527_s25 = smov [#allocation8]  }
  0x18   : > { %s377_s26 = sshll.u32 %s2527_s25, 4  ;;  %s2528_s28 = smov [#allocation9]   ;;  %s2647_s26 = int_to_ptr.vmem [resolvable:$true] %s377_s26 }
  0x19   : > { %p2643_p3 = pnand %p1885_p0, %p362_p2  ;;  %s399_s29 = sshll.u32 %s2528_s28, 4  ;;  %s2658_s29 = int_to_ptr.vmem [resolvable:$true] %s399_s29 }
  0x1a   : > { %s2529_s30 = smov [#allocation11]   ;;  %s3132_s2 = sld [smem:[#allocation26_spill]] }
  0x1b   : > { %s3130_s24 = scalar_select %p2643_p3, 1, 0 }
  0x1c   : > { %p2106_p4 = pneg %p2643_p3  ;;  %s2660_s12 = sshll.u32 %s2529_s30, 4  ;;  %s422_s12 = int_to_ptr.vmem [resolvable:$true] %s2660_s12 }
  0x1e   : > { %p2654_p6 = pnand %p2106_p4, %p3116_p1 }
  0x20   : > { %s2223_s15 = scalar_lea.hbm %s3132_s2, 512  ;;  %p2670_p8 = pneg %p2654_p6 }
  0x21   : > { %p2224_p7 = scmp.ne.s32.totalorder %s3132_s2, %s2223_s15  ;;  %p2230_p11 = scmp.lt.u32.totalorder %s2223_s15, %s3132_s2 }
  0x23   : > { %p2226_p9 = pnand %p2670_p8, %p2224_p7 }
  0x25   : > { %p2227_p10 = pneg %p2226_p9 }
  0x27   : > { %p2232_p12 = pnand %p2230_p11, %p2227_p10 }
  0x29   : > { %2235 = shalt.err (!%p2232_p12)
}
  0x2a   : > { %s2236_s13 = scalar_lea.vmem %s2647_s26, 512  ;;  %p2244_p4 = scmp.lt.s32.totalorder %s2647_s26, %s2647_s26 }
  0x2b   : > { %p2237_p13 = scmp.ne.s32.totalorder %s2647_s26, %s2236_s13  ;;  %p2245_p5 = scmp.lt.s32.totalorder %s2236_s13, %s2236_s13 }
  0x2d   : > { %p2239_p0 = pnand %p2237_p13, %p2670_p8  ;;  %p2246_p7 = por %p2245_p5, %p2244_p4 }
  0x2f   : > { %p2240_p2 = pneg %p2239_p0 }
  0x31   : > { %p2247_p9 = pnand %p2246_p7, %p2240_p2 }
  0x33   : > { %2250 = shalt.err (!%p2247_p9)
}
  0x34   : > { %s2530_s14 = smov 128   ;;  %s2531_s15 = smov 8  }
  0x35   : > { %2109 = dma.hbm_to_vmem [thread:$0]  (!%p2654_p6), %s3132_s2, 512, %s2647_s26, [#allocation7], %s2530_s14, %s2530_s14, %s2531_s15  }
  0x36   : > { %s3134_s4 = sld [smem:[#allocation27_spill]] }
  0x3c   : > { %s2251_s13 = scalar_lea.hbm %s3134_s4, 512 }
  0x3d   : > { %p2252_p5 = scmp.ne.s32.totalorder %s3134_s4, %s2251_s13  ;;  %p2258_p12 = scmp.lt.u32.totalorder %s2251_s13, %s3134_s4 }
  0x3f   : > { %p2254_p10 = pnand %p2252_p5, %p2670_p8 }
  0x41   : > { %p2255_p11 = pneg %p2254_p10 }
  0x43   : > { %p2260_p13 = pnand %p2258_p12, %p2255_p11 }
  0x45   : > { %2263 = shalt.err (!%p2260_p13)
}
  0x46   : > { %s2264_s26 = scalar_lea.vmem %s2658_s29, 512  ;;  %p2272_p7 = scmp.lt.s32.totalorder %s2658_s29, %s2658_s29 }
  0x47   : > { %p2265_p0 = scmp.ne.s32.totalorder %s2658_s29, %s2264_s26  ;;  %p2273_p9 = scmp.lt.s32.totalorder %s2264_s26, %s2264_s26 }
  0x49   : > { %p2267_p2 = pnand %p2265_p0, %p2670_p8  ;;  %p2274_p5 = por %p2273_p9, %p2272_p7 }
  0x4b   : > { %p2268_p4 = pneg %p2267_p2 }
  0x4d   : > { %p2275_p10 = pnand %p2274_p5, %p2268_p4 }
  0x4f   : > { %2278 = shalt.err (!%p2275_p10)
}
  0x50   : > { %2112 = dma.hbm_to_vmem [thread:$0]  (!%p2654_p6), %s3134_s4, 512, %s2658_s29, [#allocation10], %s2530_s14, %s2530_s14, %s2531_s15  }
  0x51   : > { %s3135_s6 = sld [smem:[#allocation28_spill]] }
  0x57   : > { %s2279_s16 = scalar_lea.hbm %s3135_s6, 512 }
  0x58   : > { %p2280_p11 = scmp.ne.s32.totalorder %s3135_s6, %s2279_s16  ;;  %p2286_p0 = scmp.lt.u32.totalorder %s2279_s16, %s3135_s6 }
  0x5a   : > { %p2282_p12 = pnand %p2280_p11, %p2670_p8 }
  0x5c   : > { %p2283_p13 = pneg %p2282_p12 }
  0x5e   : > { %p2288_p2 = pnand %p2286_p0, %p2283_p13 }
  0x60   : > { %2291 = shalt.err (!%p2288_p2)
}
  0x61   : > { %s2292_s26 = scalar_lea.vmem %s422_s12, 512  ;;  %p2300_p5 = scmp.lt.s32.totalorder %s422_s12, %s422_s12 }
  0x62   : > { %p2293_p4 = scmp.ne.s32.totalorder %s422_s12, %s2292_s26  ;;  %p2301_p10 = scmp.lt.s32.totalorder %s2292_s26, %s2292_s26 }
  0x64   : > { %p2295_p7 = pnand %p2293_p4, %p2670_p8  ;;  %p2302_p1 = por %p2301_p10, %p2300_p5 }
  0x66   : > { %p2296_p9 = pneg %p2295_p7 }
  0x68   : > { %p2303_p3 = pnand %p2302_p1, %p2296_p9 }
  0x6a   : > { %2306 = shalt.err (!%p2303_p3)
}
  0x6b   : > { %2115 = dma.hbm_to_vmem [thread:$0]  (!%p2654_p6), %s3135_s6, 512, %s422_s12, [#allocation10], %s2530_s14, %s2530_s14, %s2531_s15  }
  0x6c   : > { %s2532_s9 = smov [#allocation12]   ;;  %s3136_s8 = sld [smem:[#allocation30_spill]] }
  0x6d   : > { %s443_s11 = sshll.u32 %s2532_s9, 4  ;;  %s444_s11 = int_to_ptr.vmem [resolvable:$true] %s443_s11 }
  0x72   : > { %s2307_s25 = scalar_lea.hbm %s3136_s8, 512 }
  0x73   : > { %p2308_p1 = scmp.ne.s32.totalorder %s3136_s8, %s2307_s25  ;;  %p2314_p12 = scmp.lt.u32.totalorder %s2307_s25, %s3136_s8 }
  0x75   : > { %p2310_p3 = pnand %p2308_p1, %p2670_p8 }
  0x77   : > { %p2311_p11 = pneg %p2310_p3 }
  0x79   : > { %p2316_p13 = pnand %p2314_p12, %p2311_p11 }
  0x7b   : > { %2319 = shalt.err (!%p2316_p13)
}
  0x7c   : > { %s2320_s12 = scalar_lea.vmem %s444_s11, 512  ;;  %p2328_p7 = scmp.lt.s32.totalorder %s444_s11, %s444_s11 }
  0x7d   : > { %p2321_p0 = scmp.ne.s32.totalorder %s444_s11, %s2320_s12  ;;  %p2329_p9 = scmp.lt.s32.totalorder %s2320_s12, %s2320_s12 }
  0x7f   : > { %p2323_p2 = pnand %p2321_p0, %p2670_p8  ;;  %p2330_p5 = por %p2329_p9, %p2328_p7 }
  0x81   : > { %p2324_p4 = pneg %p2323_p2 }
  0x83   : > { %p2331_p10 = pnand %p2330_p5, %p2324_p4 }
  0x85   : > { %2334 = shalt.err (!%p2331_p10)
}
  0x86   : > { %2118 = dma.hbm_to_vmem [thread:$0]  (!%p2654_p6), %s3136_s8, 512, %s444_s11, [#allocation13], %s2530_s14, %s2530_s14, %s2531_s15  }
  0x87   : > { %s1884_s10 = sadd.s32 4294967294, %s2525_s22   ;;  %s48_s27 = sadd.s32 1, %s2521_s21 }
  0x88   : > { %p50_p8 = scmp.ge.s32.totalorder %s48_s27, 2  ;;  %s55_s9 = sadd.s32 1, %s2513_s19 }
  0x89   : > { %p62_p1 = scmp.ne.s32.totalorder %s2513_s19, %s2509_s18  ;;  %p63_p3 = scmp.eq.s32.totalorder %s2525_s22, 0 }
  0x8a   : > { %s3167_s27 = smov (%p50_p8, %s48_s27), 0  ;;  %p68_p12 = scmp.ne.s32.totalorder %s2509_s18, %s2505_s17 }
  0x8b   : > { %3137 = sst [smem:[#allocation25_spill]] %s3167_s27  ;;  %p2771_p11 = por %p63_p3, %p62_p1 }
  0x8c   : > { %s52_s14 = ssub.s32 %s2521_s21, %s3167_s27  ;;  %p321_p6 = scmp.eq.s32.totalorder %s2638_s23, 1 }
  0x8d   : > { %p53_p13 = scmp.eq.s32.totalorder %s52_s14, 0  ;;  %p3139_p0 = scmp.eq.s32.totalorder %s2638_s23, 0 }
  0x8e   : > { %p2786_p4 = por %p321_p6, %p62_p1  ;;  %p327_p7 = scmp.eq.s32.totalorder %s1884_s10, 1 }
  0x8f   : > { %p2782_p2 = por %p3139_p0, %p68_p12  ;;  %p2137_p5 = scmp.lt.s32.totalorder %s2525_s22, 2 }
  0x90   : > { %s3141_s11 = scalar_select %p2786_p4, 1, 0 }
  0x91   : > { %s3140_s15 = scalar_select %p2782_p2, 1, 0 }
  0x92   : > { %s2791_s16 = scalar_select %p53_p13, %s2513_s19, %s55_s9  }
  0x93   : > { %p2793_p9 = por %p327_p7, %p68_p12  ;;  %s460_s28 = sand.u32 1, %s2513_s19  }
  0x94   : > { %s1895_s30 = sshll.u32 %s2521_s21, 7  ;;  %s2800_s13 = sshll.u32 %s460_s28, 3 }
  0x95   : > { %s3142_s25 = scalar_select %p2793_p9, 1, 0 }
  0x96   : > { %s2805_s29 = scalar_lea.hbm %s3101_s0, %s1895_s30  ;;  %s464_s7 = scalar_lea.vmem [#allocation3], %s2800_s13 }
  0x97   : > { %s471_s10 = sshll.u32 %s464_s7, 4  ;;  %p2810_p10 = pnand %p2137_p5, %p2771_p11  ;;  %s2814_s10 = int_to_ptr.vmem [resolvable:$true] %s471_s10 }
  0x98   : > { %s2819_s12 = scalar_lea.hbm %s3102_s1, %s1895_s30  ;;  %s461_s2 = scalar_lea.sflag [#allocation4], %s460_s28 }
  0x99   : > { %s2335_s4 = scalar_lea.hbm %s2805_s29, 128  ;;  %p2337_p1 = pneg %p2810_p10 }
  0x9a   : > { %p2336_p8 = scmp.ne.s32.totalorder %s2805_s29, %s2335_s4  ;;  %s2340_s6 = scalar_lea.hbm %s3101_s0, 256 }
  0x9b   : > { %p2341_p12 = scmp.lt.u32.totalorder %s2805_s29, %s3101_s0  ;;  %p2342_p6 = scmp.lt.u32.totalorder %s2340_s6, %s2335_s4 }
  0x9c   : > { %p2338_p3 = pnand %p2337_p1, %p2336_p8  ;;  %p2344_p0 = scmp.lt.u32.totalorder %s2335_s4, %s2805_s29 }
  0x9d   : > { %p2343_p13 = por %p2342_p6, %p2341_p12 }
  0x9e   : > { %p2339_p11 = pneg %p2338_p3 }
  0x9f   : > { %p2345_p7 = por %p2344_p0, %p2343_p13 }
  0xa1   : > { %p2346_p5 = pnand %p2345_p7, %p2339_p11 }
  0xa3   : > { %2349 = shalt.err (!%p2346_p5)
}
  0xa4   : > { %s2350_s28 = scalar_lea.vmem %s2814_s10, 128  ;;  %s2533_s30 = smov [#allocation3]  }
  0xa5   : > { %p2351_p8 = scmp.ne.s32.totalorder %s2814_s10, %s2350_s28  ;;  %s2355_s14 = sshll.u32 %s2533_s30, 4  ;;  %s2356_s14 = int_to_ptr.vmem [resolvable:$false] %s2355_s14 }
  0xa6   : > { %s2357_s8 = scalar_lea.vmem %s2356_s14, 256  ;;  %p2358_p4 = scmp.lt.s32.totalorder %s2814_s10, %s2356_s14 }
  0xa7   : > { %p2353_p3 = pnand %p2351_p8, %p2337_p1  ;;  %p2359_p12 = scmp.lt.s32.totalorder %s2357_s8, %s2350_s28 }
  0xa9   : > { %p2354_p9 = pneg %p2353_p3  ;;  %p2360_p6 = por %p2359_p12, %p2358_p4 }
  0xab   : > { %p2361_p13 = pnand %p2360_p6, %p2354_p9 }
  0xad   : > { %2364 = shalt.err (!%p2361_p13)
}
  0xae   : > { %2122 = dma.hbm_to_vmem [thread:$0]  (!%p2810_p10), %s2805_s29, 128, %s2814_s10, %s461_s2  }
  0xaf   : > { %s478_s4 = sand.u32 1, %s2525_s22   ;;  %s482_s6 = scalar_lea.vmem [#allocation6], %s2800_s13 }
  0xb0   : > { %s489_s27 = sshll.u32 %s482_s6, 4  ;;  %s479_s26 = scalar_lea.sflag [#allocation7], %s478_s4  ;;  %s490_s27 = int_to_ptr.vmem [resolvable:$true] %s489_s27 }
  0xb1   : > { %s2365_s20 = scalar_lea.hbm %s2819_s12, 128  ;;  %s2370_s30 = scalar_lea.hbm %s3102_s1, 256 }
  0xb2   : > { %p2366_p4 = scmp.ne.s32.totalorder %s2819_s12, %s2365_s20  ;;  %p2371_p0 = scmp.lt.u32.totalorder %s2819_s12, %s3102_s1 }
  0xb3   : > { %p2372_p7 = scmp.lt.u32.totalorder %s2370_s30, %s2365_s20  ;;  %p2374_p8 = scmp.lt.u32.totalorder %s2365_s20, %s2819_s12 }
  0xb4   : > { %p2368_p9 = pnand %p2366_p4, %p2337_p1 }
  0xb5   : > { %p2373_p5 = por %p2372_p7, %p2371_p0 }
  0xb6   : > { %p2369_p11 = pneg %p2368_p9 }
  0xb7   : > { %p2375_p3 = por %p2374_p8, %p2373_p5 }
  0xb9   : > { %p2376_p12 = pnand %p2375_p3, %p2369_p11 }
  0xbb   : > { %2379 = shalt.err (!%p2376_p12)
}
  0xbc   : > { %s2380_s2 = scalar_lea.vmem %s490_s27, 128  ;;  %s2534_s13 = smov [#allocation6]  }
  0xbd   : > { %p2381_p6 = scmp.ne.s32.totalorder %s490_s27, %s2380_s2  ;;  %s2385_s29 = sshll.u32 %s2534_s13, 4  ;;  %s2386_s29 = int_to_ptr.vmem [resolvable:$false] %s2385_s29 }
  0xbe   : > { %s2387_s10 = scalar_lea.vmem %s2386_s29, 256  ;;  %p2388_p9 = scmp.lt.s32.totalorder %s490_s27, %s2386_s29 }
  0xbf   : > { %p2383_p13 = pnand %p2381_p6, %p2337_p1  ;;  %p2389_p2 = scmp.lt.s32.totalorder %s2387_s10, %s2380_s2 }
  0xc1   : > { %p2384_p4 = pneg %p2383_p13  ;;  %p2390_p0 = por %p2389_p2, %p2388_p9 }
  0xc3   : > { %p2391_p7 = pnand %p2390_p0, %p2384_p4 }
  0xc5   : > { %2394 = shalt.err (!%p2391_p7)
}
  0xc6   : > { %2125 = dma.hbm_to_vmem [thread:$0]  (!%p2810_p10), %s2819_s12, 128, %s490_s27, %s479_s26  }
  0xc7   : > { %p3144_p11 = scmp.ne.s32.totalorder %s3130_s24, 0 }
  0xc8   : > { %s2870_s4 = sand.u32 (!%p3144_p11), 1, %s2509_s18   ;;  %p3145_p2 = scmp.ne.s32.totalorder (!%p3144_p11), %s3140_s15, 0 }
  0xc9   : > { %498 = sbr.rel (%p3144_p11) target bundleno = 2143 (0x85f), region = 60  ;;  %s2873_s6 = sshll.u32 (!%p3144_p11), %s2870_s4, 3 }
  0xca   : > { %s501_s20 = scalar_lea.sflag (!%p3144_p11), [#allocation4], %s2870_s4  ;;  %s504_s7 = scalar_lea.vmem (!%p3144_p11), [#allocation3], %s2873_s6 }
  0xd0   : > { %2476 = dma.done.wait (%p3145_p2), %s501_s20, 128  }
  0xd1   : > { %2478 = vsyncadd (%p3145_p2), %s501_s20, 4294967168  ;;  %s509_s24 = sand.u32 1, %s2638_s23   ;;  %s513_s12 = scalar_lea.vmem [#allocation6], %s2873_s6 }
  0xd2   : > { %s510_s9 = scalar_lea.sflag [#allocation7], %s509_s24 }
  0xd3   : > { %2480 = dma.done.wait (%p3145_p2), %s510_s9, 128  }
  0xd4   : > { %2482 = vsyncadd (%p3145_p2), %s510_s9, 4294967168  ;;  %p3146_p10 = scmp.eq.s32.totalorder %s2638_s23, 0 }
  0xd6   : > { %2484 = dma.done.wait (%p3146_p10), [#allocation7], 512   ;;  %p3147_p1 = pmov %p3146_p10 }
  0xd8   : > { %2486 = vsyncadd (%p3147_p1), [#allocation7], 4294966784  ;;  %p3148_p5 = pmov %p3147_p1 }
  0xd9   : > { %p3149_p8 = pmov %p3147_p1 }
  0xda   : > { %2488 = dma.done.wait (%p3148_p5), [#allocation10], 1024  }
  0xdb   : > { %2490 = vsyncadd (%p3149_p8), [#allocation10], 4294966272  ;;  %p3150_p3 = pmov %p3147_p1 }
  0xdc   : > { %p3151_p12 = pmov %p3147_p1 }
  0xdd   : > { %2492 = dma.done.wait (%p3150_p3), [#allocation13], 512  }
  0xde   : > { %2494 = vsyncadd (%p3151_p12), [#allocation13], 4294966784  ;;  %v2535_v0 = vmov 0.0|0.0   ;;  %vm2536_vm0 = vmmov 0   ;;  %v2537_v1 = vmov 0.0   ;;  %v684_v2 = vld [vmem:[#allocation9] sm:$0xff] }
  0xdf   : > { %2064 = vmatprep.subr.bf16.mxu1 %v2535_v0  ;;  %2058 = vmatprep.subr.bf16.mxu0 %v2535_v0  ;;  %v685_v3 = vld [vmem:[#allocation9 + $0x8] sm:$0xff]  ;;  %v599_v4 = vld [vmem:[#allocation8] sm:$0xff]  ;;  %v686_v7 = vld [vmem:[#allocation9 + $0x10] sm:$0xff]  ;;  %vm610_vm1 = vcmask 261120   ;;  %vm846_vm2 = vcmask 64512   ;;  %s2538_s28 = smov 120  }
  0xe0   : > { %1993 = vmatprep.mubr.msk.f32.mxu1 %vm2536_vm0, %v2537_v1  ;;  %1982 = vmatprep.mubr.msk.f32.mxu0 %vm2536_vm0, %v2537_v1  ;;  %v2065_v5 = vpack.c.bf16 %v685_v3, %v684_v2  ;;  %v600_v6 = vld [vmem:[#allocation8 + $0x8] sm:$0xff]  ;;  %v687_v8 = vld [vmem:[#allocation9 + $0x18] sm:$0xff]  ;;  %v601_v10 = vld [vmem:[#allocation8 + $0x10] sm:$0xff]  ;;  %s2539_s30 = smov 112   ;;  %s2540_s14 = smov 104   ;;  %vm1527_vm3 = vcmask 130048  }
  0xe1   : > { %v2059_v9 = vpack.c.bf16 %v600_v6, %v599_v4  ;;  %v602_v11 = vld [vmem:[#allocation8 + $0x18] sm:$0xff]  ;;  %v2068_v12 = vpack.c.bf16 %v687_v8, %v686_v7  ;;  %v597_v14 = vld [vmem:[%s504_s7] sm:$0xff]  ;;  %v767_v25 = vld [vmem:[#allocation11 + $0x10] sm:$0xff]  ;;  %s3152_s13 = sld [smem:[#allocation29_spill]]  ;;  %s1906_s29 = sshll.u32 %s2870_s4, 5  ;;  %vm1529_vm4 = vcmask 195584  }
  0xe2   : > { %2066 = vmatpush3.bf16.msra.mxu1 %v2065_v5  ;;  %v2062_v13 = vpack.c.bf16 %v602_v11, %v601_v10  ;;  %v1909_v15 = vld [vmem:[%s3106_s5] ss:$0 sm:$0xff]  ;;  %v765_v23 = vld [vmem:[#allocation11] sm:$0xff]  ;;  %v766_v24 = vld [vmem:[#allocation11 + $0x8] sm:$0xff]  ;;  %s2961_s10 = scalar_lea.vmem [#allocation15], %s1906_s29  ;;  %s2541_s20 = smov 8  }
  0xe3   : > { %2060 = vmatpush3.bf16.msra.mxu0 %v2059_v9  ;;  %2067 = vmatprep.subr.bf16.mxu1 %v2535_v0  ;;  %v1907_v16 = vld [vmem:[%s3104_s3] ss:$0 sm:$0xff]  ;;  %v2071_v26 = vpack.c.bf16 %v766_v24, %v765_v23  ;;  %s2542_s7 = smov 16   ;;  %s3153_s24 = sld [smem:[#allocation24_spill]] }
  0xe4   : > { %2061 = vmatprep.subr.bf16.mxu0 %v2535_v0  ;;  %v768_v27 = vld [vmem:[#allocation11 + $0x18] sm:$0xff]  ;;  %s2543_s9 = smov 24   ;;  %s3154_s15 = sld [smem:[#allocation31_spill]] }
  0xe5   : > { %v2074_v28 = vpack.c.bf16 %v768_v27, %v767_v25  ;;  %v598_v29 = vld [vmem:[%s513_s12] sm:$0xff]  ;;  %s1662_s26 = sshll.u32 %s2961_s10, 4  ;;  %s1634_s2 = scalar_lea.sflag [#allocation16], %s2870_s4  ;;  %s3018_s26 = int_to_ptr.vmem [resolvable:$true] %s1662_s26 }
  0xe6   : > { %2069 = vmatpush3.bf16.msra.mxu1 %v2068_v12  ;;  %p3156_p13 = scmp.ne.s32.totalorder %s3141_s11, 0  ;;  %s2544_s29 = smov [#allocation15]  }
  0xe7   : > { %2063 = vmatpush3.bf16.msra.mxu0 %v2062_v13  ;;  %2007 = vmatprep.subr.mxu1 %v2537_v1  ;;  %v1911_v40 = vld [vmem:[%s3152_s13] ss:$0 sm:$0xff]  ;;  %s2395_s13 = scalar_lea.vmem %s3018_s26, 512 }
  0xe8   : > { %2070 = vmatprep.subr.bf16.mxu0 %v2535_v0  ;;  %p2396_p6 = scmp.ne.s32.totalorder %s3018_s26, %s2395_s13 }
  0xe9   : > { %1994 = vmatmul.mubr.msk.f32.vlgmr.msra.gmra.mrb[0].mxu1 %vm610_vm1, %v597_v14  ;;  %s1937_s27 = sshll.u32 %s3153_s24, 9 }
  0xea   : > { %1983 = vmatmul.mubr.msk.f32.vlgmr.msra.gmra.mrb[0].mxu0 %vm610_vm1, %v597_v14  ;;  %2009 = vmatprep.mubr.msk.f32.mxu1 %vm2536_vm0, %v2537_v1  ;;  %p2397_p4 = pnand %p2396_p6, %p3156_p13 }
  0xeb   : > { %2004 = vmatprep.mubr.msk.f32.mxu0 %vm2536_vm0, %v2537_v1  ;;  %2072 = vmatpush3.bf16.msra.mxu0 %v2071_v26 }
  0xec   : > { %2073 = vmatprep.subr.bf16.mxu0 %v2535_v0  ;;  %p2398_p9 = pneg %p2397_p4 }
  0xef   : > { %2075 = vmatpush3.bf16.msra.mxu0 %v2074_v28 }
  0xf0   : > { %2027 = vmatprep.subr.mxu0 %v2537_v1 }
  0xf2   : > { %2005 = vmatmul.mubr.msk.f32.vlgmr.msra.gmra.mrb[2].mxu0 %vm610_vm1, %v597_v14 }
  0xf3   : > { %2029 = vmatprep.mubr.msk.f32.mxu0 %vm2536_vm0, %v2537_v1 }
 0x1bc   : > { %v761_v17 = vpop.f32.mrb[0].mxu1 }
 0x1bd   : > { %v762_v18 = vadd.f32 %v1909_v15, %v761_v17  ;;  %v1995_v19 = vpop.f32.mrb[1].mxu1  ;;  %v680_v20 = vpop.f32.mrb[0].mxu0 }
 0x1be   : > { %v681_v21 = vadd.f32 %v1907_v16, %v680_v20  ;;  %v1984_v22 = vpop.f32.mrb[1].mxu0 }
 0x1bf   : > { %1011 = vrot.lane.b32.xlu1 %v762_v18, %s2538_s28  ;;  %2008 = vmatpush3.xpose.msk.msra.mxu1 %vm846_vm2, %v762_v18 }
 0x1c0   : > { %2012 = vmatprep.subr.mxu1 %v2537_v1 }
 0x1c2   : > { %2010 = vmatmul.mubr.msk.f32.vlgmr.msra.gmra.mrb[2].mxu1 %vm846_vm2, %v681_v21 }
 0x1c3   : > { %1009 = vrot.lane.b32.xlu1 %v681_v21, %s2538_s28  ;;  %2014 = vmatprep.mubr.msk.f32.mxu1 %vm2536_vm0, %v2537_v1 }
 0x1c5   : > { %v842_v41 = vpop.f32.mrb[2].mxu0 }
 0x1c6   : > { %v2945_v42 = vadd.f32 %v1911_v40, %v842_v41  ;;  %v2006_v43 = vpop.f32.mrb[3].mxu0 }
 0x1c7   : > { %1178 = vrot.lane.b32.xlu1 %v681_v21, %s2539_s30 }
 0x1c8   : > { %2013 = vmatpush3.msra.mxu1 %v2945_v42 }
 0x1c9   : > { %2017 = vmatprep.subr.mxu1 %v2537_v1 }
 0x1cb   : > { %1348 = vrot.lane.b32.xlu1 %v762_v18, %s2540_s14 }
 0x1cf   : > { %1346 = vrot.lane.b32.xlu1 %v681_v21, %s2540_s14 }
 0x231   : > { %v1012_v44 = vpop.permute.xlu1 %1011 }
 0x235   : > { %v1010_v45 = vpop.permute.xlu1 %1009 }
 0x239   : > { %v1179_v46 = vpop.permute.xlu1 %1178 }
 0x23d   : > { %v1349_v49 = vpop.permute.xlu1 %1348 }
 0x241   : > { %v1347_v51 = vpop.permute.xlu1 %1346 }
 0x295   : > { %v919_v30 = vpop.f32.mrb[2].mxu1 }
 0x296   : > { %v920_v31 = vadd.f32 %v919_v30, %v598_v29  ;;  %v2011_v32 = vpop.f32.mrb[3].mxu1 }
 0x298   : > { %v923_v33 = vmax.f32 %v920_v31, -3.4028235e+38 }
 0x29a   : > { %v924_v34 = vsel %vm846_vm2, %v923_v33, -inf }
 0x29b   : > { %925 = vmax.xlane.f32.xlu0 %v924_v34 }
 0x328   : > { %v926_v35 = vpop.xlane.xlu0 %925 }
 0x329   : > { %v927_v36 = vsub.f32 %v923_v33, %v926_v35  ;;  %v1531_v35 = vld [vmem:[#allocation12] sm:$0xff] }
 0x32b   : > { %v928_v37 = vmul.f32 1.442695, %v927_v36  ;;  %v1532_v36 = vld [vmem:[#allocation12 + $0x8] sm:$0xff] }
 0x32d   : > { %2207 = vpow2.f32 %v928_v37  ;;  %v2077_v37 = vpack.c.bf16 %v1532_v36, %v1531_v35 }
 0x337   : > { %v2208_v38 = vpop.eup %2207 }
 0x338   : > { %v930_v39 = vsel %vm846_vm2, %v2208_v38, 0.0 }
 0x339   : > { %931 = vadd.xlane.f32.xlu0 %v930_v39  ;;  %v1534_v39 = vld [vmem:[#allocation12 + $0x18] sm:$0xff] }
 0x34f   : > { %1180 = vrot.lane.b32.xlu0 %v762_v18, %s2539_s30 }
 0x3c6   : > { %v932_v47 = vpop.xlane.xlu0 %931 }
 0x3c7   : > { %2209 = vrcp.f32 %v932_v47 }
 0x3ca   : > { %v1181_v48 = vpop.permute.xlu0 %1180 }
 0x3cb   : > { %2028 = vmatpush3.xpose.msk.msra.mxu0 %vm846_vm2, %v1181_v48 }
 0x3cc   : > { %2037 = vmatprep.subr.mxu0 %v2537_v1 }
 0x3ce   : > { %2030 = vmatmul.mubr.msk.f32.vlgmr.msra.gmra.mrb[4].mxu0 %vm846_vm2, %v1179_v46 }
 0x3cf   : > { %2038 = vmatpush3.xpose.msk.msra.mxu0 %vm846_vm2, %v1349_v49  ;;  %2039 = vmatprep.mubr.msk.f32.mxu0 %vm2536_vm0, %v2537_v1 }
 0x3d0   : > { %2076 = vmatprep.subr.bf16.mxu0 %v2535_v0 }
 0x3d1   : > { %v2210_v50 = vpop.eup %2209 }
 0x3d2   : > { %v934_v52 = vmul.f32 %v2210_v50, %v2208_v38  ;;  %2040 = vmatmul.mubr.msk.f32.vlgmr.msra.gmra.mrb[6].mxu0 %vm846_vm2, %v1347_v51  ;;  %v1533_v38 = vld [vmem:[#allocation12 + $0x10] sm:$0xff]  ;;  %v1929_v51 = vld [vmem:[%s3154_s15] ss:$0 sm:$0xff] }
 0x3d3   : > { %2055 = vmatprep.mubr.msk.f32.mxu0 %vm2536_vm0, %v2537_v1  ;;  %2078 = vmatpush3.bf16.msra.mxu0 %v2077_v37  ;;  %v2080_v40 = vpack.c.bf16 %v1534_v39, %v1533_v38  ;;  %1619 = vst.msk [vmem:[#allocation2] sm:$0xff] %vm610_vm1, %v1929_v51 }
 0x3d4   : > { %935 = vst.msk [vmem:[%s2961_s10] sm:$0xff] %vm846_vm2, %v934_v52  ;;  %2015 = vmatmul.mubr.msk.f32.vlgmr.msra.gmra.mrb[4].mxu1 %vm846_vm2, %v934_v52  ;;  %2079 = vmatprep.subr.bf16.mxu0 %v2535_v0 }
 0x3d5   : > { %2018 = vmatpush3.xpose.msk.msra.mxu1 %vm846_vm2, %v1012_v44  ;;  %2019 = vmatprep.mubr.msk.f32.mxu1 %vm2536_vm0, %v2537_v1 }
 0x3d6   : > { %2022 = vmatprep.subr.mxu1 %v2537_v1 }
 0x3d7   : > { %2081 = vmatpush3.bf16.msra.mxu0 %v2080_v40 }
 0x3d8   : > { %2020 = vmatmul.mubr.msk.f32.vlgmr.msra.gmra.mrb[6].mxu1 %vm846_vm2, %v1010_v45 }
 0x3d9   : > { %2024 = vmatprep.mubr.msk.f32.mxu1 %vm2536_vm0, %v2537_v1 }
 0x4a1   : > { %v1252_v53 = vpop.f32.mrb[4].mxu0 }
 0x4a2   : > { %v1253_v54 = vadd.f32 %v1252_v53, %v598_v29  ;;  %v2031_v55 = vpop.f32.mrb[5].mxu0 }
 0x4a4   : > { %v1256_v56 = vmax.f32 %v1253_v54, -3.4028235e+38 }
 0x4a5   : > { %v1420_v57 = vpop.f32.mrb[6].mxu0 }
 0x4a6   : > { %v2041_v58 = vpop.f32.mrb[7].mxu0  ;;  %v1257_v59 = vsel %vm846_vm2, %v1256_v56, -inf  ;;  %v1421_v63 = vadd.f32 %v1420_v57, %v598_v29 }
 0x4a7   : > { %v2974_v60 = vpop.f32.mrb[4].mxu1  ;;  %1258 = vmax.xlane.f32.xlu0 %v1257_v59 }
 0x4a8   : > { %v2016_v61 = vpop.f32.mrb[5].mxu1  ;;  %v1424_v5 = vmax.f32 %v1421_v63, -3.4028235e+38 }
 0x4aa   : > { %v1425_v7 = vsel %vm846_vm2, %v1424_v5, -inf }
 0x4ab   : > { %v1083_v62 = vpop.f32.mrb[6].mxu1 }
 0x4ac   : > { %v1084_v2 = vadd.f32 %v1083_v62, %v598_v29  ;;  %v2021_v3 = vpop.f32.mrb[7].mxu1 }
 0x4ae   : > { %v1087_v4 = vmax.f32 %v1084_v2, -3.4028235e+38 }
 0x4b0   : > { %v1088_v6 = vsel %vm846_vm2, %v1087_v4, -inf }
 0x4b1   : > { %1089 = vmax.xlane.f32.xlu1 %v1088_v6 }
 0x4b5   : > { %1426 = vmax.xlane.f32.xlu1 %v1425_v7 }
 0x534   : > { %v1259_v8 = vpop.xlane.xlu0 %1258 }
 0x535   : > { %v1260_v9 = vsub.f32 %v1256_v56, %v1259_v8 }
 0x537   : > { %v1261_v10 = vmul.f32 1.442695, %v1260_v9 }
 0x539   : > { %2211 = vpow2.f32 %v1261_v10 }
 0x53e   : > { %v1090_v11 = vpop.xlane.xlu1 %1089 }
 0x53f   : > { %v1091_v19 = vsub.f32 %v1087_v4, %v1090_v11 }
 0x541   : > { %v1092_v20 = vmul.f32 1.442695, %v1091_v19 }
 0x542   : > { %v1427_v12 = vpop.xlane.xlu1 %1426 }
 0x543   : > { %v2212_v13 = vpop.eup %2211  ;;  %v1428_v14 = vsub.f32 %v1424_v5, %v1427_v12 }
 0x544   : > { %v1263_v15 = vsel %vm846_vm2, %v2212_v13, 0.0 }
 0x545   : > { %v1429_v16 = vmul.f32 1.442695, %v1428_v14  ;;  %1264 = vadd.xlane.f32.xlu0 %v1263_v15 }
 0x547   : > { %2213 = vpow2.f32 %v1429_v16 }
 0x548   : > { %2215 = vpow2.f32 %v1092_v20 }
 0x551   : > { %v2214_v17 = vpop.eup %2213 }
 0x552   : > { %v1431_v18 = vsel %vm846_vm2, %v2214_v17, 0.0  ;;  %v2216_v21 = vpop.eup %2215 }
 0x553   : > { %1432 = vadd.xlane.f32.xlu1 %v1431_v18  ;;  %v1094_v22 = vsel %vm846_vm2, %v2216_v21, 0.0 }
 0x55b   : > { %1102 = vrot.lane.b32.xlu0 %v2945_v42, %s2538_s28 }
 0x564   : > { %1270 = vrot.lane.b32.xlu1 %v2945_v42, %s2539_s30 }
 0x588   : > { %1095 = vadd.xlane.f32.xlu1 %v1094_v22 }
 0x599   : > { %1438 = vrot.lane.b32.xlu1 %v2945_v42, %s2540_s14  ;;  %s3155_s14 = sld [smem:[#allocation33_spill]] }
 0x59f   : > { %s3016_s8 = scalar_lea.hbm %s3155_s14, %s1937_s27 }
 0x5d2   : > { %v1265_v23 = vpop.xlane.xlu0 %1264 }
 0x5d3   : > { %2217 = vrcp.f32 %v1265_v23 }
 0x5d6   : > { %v1103_v24 = vpop.permute.xlu0 %1102 }
 0x5d7   : > { %2023 = vmatpush3.msra.mxu1 %v1103_v24 }
 0x5d8   : > { %2032 = vmatprep.subr.mxu1 %v2537_v1 }
 0x5dd   : > { %v2218_v25 = vpop.eup %2217 }
 0x5de   : > { %v1267_v26 = vmul.f32 %v2218_v25, %v2212_v13 }
 0x5e0   : > { %1922 = vst.msk [vmem:[%s2961_s10 + $0x10] sm:$0xff] %vm846_vm2, %v1267_v26  ;;  %v1433_v27 = vpop.xlane.xlu1 %1432 }
 0x5e1   : > { %2219 = vrcp.f32 %v1433_v27 }
 0x5e4   : > { %v1271_v30 = vpop.permute.xlu1 %1270 }
 0x5eb   : > { %v2220_v28 = vpop.eup %2219 }
 0x5ec   : > { %v1435_v29 = vmul.f32 %v2220_v28, %v2214_v17 }
 0x5ee   : > { %1926 = vst.msk [vmem:[%s2961_s10 + $0x18] sm:$0xff] %vm846_vm2, %v1435_v29 }
 0x615   : > { %v1096_v31 = vpop.xlane.xlu1 %1095 }
 0x616   : > { %2221 = vrcp.f32 %v1096_v31 }
 0x619   : > { %v1439_v34 = vpop.permute.xlu1 %1438 }
 0x620   : > { %v2222_v32 = vpop.eup %2221 }
 0x621   : > { %v1098_v33 = vmul.f32 %v2222_v32, %v2216_v21 }
 0x623   : > { %1918 = vst.msk [vmem:[%s2961_s10 + $0x8] sm:$0xff] %vm846_vm2, %v1098_v33  ;;  %2025 = vmatmul.mubr.msk.f32.vlgmr.msra.gmra.mrb[8].mxu1 %vm846_vm2, %v1098_v33 }
 0x624   : > { %2033 = vmatpush3.msra.mxu1 %v1271_v30  ;;  %2034 = vmatprep.mubr.msk.f32.mxu1 %vm2536_vm0, %v2537_v1 }
 0x625   : > { %2042 = vmatprep.subr.mxu1 %v2537_v1 }
 0x627   : > { %2035 = vmatmul.mubr.msk.f32.vlgmr.msra.gmra.mrb[10].mxu1 %vm846_vm2, %v1267_v26 }
 0x628   : > { %2043 = vmatpush3.msra.mxu1 %v1439_v34  ;;  %2044 = vmatprep.mubr.msk.f32.mxu1 %vm2536_vm0, %v2537_v1 }
 0x62b   : > { %2045 = vmatmul.mubr.msk.f32.vlgmr.msra.gmra.mrb[12].mxu1 %vm846_vm2, %v1435_v29 }
 0x6f6   : > { %v1174_v41 = vpop.f32.mrb[8].mxu1 }
 0x6f7   : > { %1515 = vrot.lane.b32.xlu0 %v1174_v41, %s2541_s20  ;;  %v2026_v42 = vpop.f32.mrb[9].mxu1 }
 0x6fa   : > { %v1342_v43 = vpop.f32.mrb[10].mxu1 }
 0x6fb   : > { %1519 = vrot.lane.b32.xlu1 %v1342_v43, %s2542_s7  ;;  %v2036_v1 = vpop.f32.mrb[11].mxu1  ;;  %s2399_s7 = sshll.u32 %s2544_s29, 4  ;;  %s2400_s7 = int_to_ptr.vmem [resolvable:$false] %s2399_s7 }
 0x6fc   : > { %s2401_s10 = scalar_lea.vmem %s2400_s7, 1024  ;;  %p2402_p0 = scmp.lt.s32.totalorder %s3018_s26, %s2400_s7 }
 0x6fd   : > { %p2403_p7 = scmp.lt.s32.totalorder %s2401_s10, %s2395_s13 }
 0x6fe   : > { %v1510_v44 = vpop.f32.mrb[12].mxu1 }
 0x6ff   : > { %1523 = vrot.lane.b32.xlu0 %v1510_v44, %s2543_s9  ;;  %v2046_v45 = vpop.f32.mrb[13].mxu1  ;;  %p2404_p11 = por %p2403_p7, %p2402_p0 }
 0x701   : > { %p2405_p2 = pnand %p2404_p11, %p2398_p9 }
 0x769   : > { %v1516_v0 = vpop.permute.xlu0 %1515 }
 0x76a   : > { %v1526_v47 = vsel %vm846_vm2, %v2974_v60, %v1516_v0 }
 0x76d   : > { %v1520_v46 = vpop.permute.xlu1 %1519 }
 0x76e   : > { %v1528_v48 = vsel %vm1527_vm3, %v1526_v47, %v1520_v46 }
 0x771   : > { %v1524_v49 = vpop.permute.xlu0 %1523 }
 0x772   : > { %v1530_v50 = vsel %vm1529_vm4, %v1528_v48, %v1524_v49 }
 0x773   : > { %2056 = vmatmul.mubr.msk.f32.vlgmr.msra.gmra.mrb[8].mxu0 %vm610_vm1, %v1530_v50 }
 0x774   : > { %2408 = shalt.err (!%p2405_p2)
}
 0x775   : > { %s2409_s9 = scalar_lea.hbm %s3016_s8, 512  ;;  %s2413_s15 = scalar_lea.hbm %s3155_s14, 1024 }
 0x776   : > { %p2410_p10 = scmp.ne.s32.totalorder %s3016_s8, %s2409_s9  ;;  %p2414_p8 = scmp.lt.u32.totalorder %s3016_s8, %s3155_s14 }
 0x777   : > { %p2415_p3 = scmp.lt.u32.totalorder %s2413_s15, %s2409_s9  ;;  %p2417_p6 = scmp.lt.u32.totalorder %s2409_s9, %s3016_s8 }
 0x778   : > { %p2411_p1 = pnand %p2410_p10, %p3156_p13 }
 0x779   : > { %p2416_p12 = por %p2415_p3, %p2414_p8 }
 0x77a   : > { %p2412_p5 = pneg %p2411_p1 }
 0x77b   : > { %p2418_p4 = por %p2417_p6, %p2416_p12 }
 0x77d   : > { %p2419_p9 = pnand %p2418_p4, %p2412_p5 }
 0x77f   : > { %2422 = shalt.err (!%p2419_p9)
}
 0x780   : > { %s2545_s30 = smov 128   ;;  %v1620_v52 = vld [vmem:[#allocation2] sm:$0xff]  ;;  %s1932_s13 = sshll.u32 %s3153_s24, 7 }
 0x781   : > { %2103 = dma.vmem_to_hbm [thread:$0]  (%p3156_p13), %s3018_s26, 512, %s3016_s8, %s1634_s2, %s2545_s30, %s2545_s30, %s2541_s20  }
 0x782   : > { %s579_s29 = scalar_lea.vmem [#allocation14], %s2873_s6  ;;  %s3157_s12 = sld [smem:[#allocation32_spill]] }
 0x783   : > { %s1647_s7 = sshll.u32 %s579_s29, 4  ;;  %s1629_s20 = scalar_lea.sflag [#allocation5], %s2870_s4  ;;  %s3053_s7 = int_to_ptr.vmem [resolvable:$true] %s1647_s7 }
 0x784   : > { %s2423_s26 = scalar_lea.vmem %s3053_s7, 128  ;;  %s2546_s6 = smov [#allocation14]  }
 0x785   : > { %p2424_p0 = scmp.ne.s32.totalorder %s3053_s7, %s2423_s26  ;;  %s2427_s24 = sshll.u32 %s2546_s6, 4  ;;  %s2428_s24 = int_to_ptr.vmem [resolvable:$false] %s2427_s24 }
 0x786   : > { %s2429_s8 = scalar_lea.vmem %s2428_s24, 256  ;;  %p2430_p2 = scmp.lt.s32.totalorder %s3053_s7, %s2428_s24 }
 0x787   : > { %p2425_p7 = pnand %p2424_p0, %p3156_p13  ;;  %p2431_p10 = scmp.lt.s32.totalorder %s2429_s8, %s2423_s26 }
 0x788   : > { %s3051_s23 = scalar_lea.hbm %s3157_s12, %s1932_s13 }
 0x789   : > { %p2426_p11 = pneg %p2425_p7  ;;  %p2432_p1 = por %p2431_p10, %p2430_p2 }
 0x78b   : > { %p2433_p5 = pnand %p2432_p1, %p2426_p11 }
 0x846   : > { %v1604_v53 = vpop.f32.mrb[8].mxu0 }
 0x847   : > { %v1621_v54 = vadd.f32 %v1620_v52, %v1604_v53  ;;  %v2057_v55 = vpop.f32.mrb[9].mxu0 }
 0x849   : > { %1622 = vst.msk [vmem:[#allocation2] sm:$0xff] %vm610_vm1, %v1621_v54 }
 0x850   : > { %v1626_v56 = vld [vmem:[#allocation2] sm:$0xff] }
 0x851   : > { %1627 = vst.msk [vmem:[%s579_s29] sm:$0xff] %vm610_vm1, %v1626_v56 }
 0x852   : > { %2436 = shalt.err (!%p2433_p5)
}
 0x853   : > { %s2437_s4 = scalar_lea.hbm %s3051_s23, 128  ;;  %s2441_s27 = scalar_lea.hbm %s3157_s12, 256 }
 0x854   : > { %p2438_p8 = scmp.ne.s32.totalorder %s3051_s23, %s2437_s4  ;;  %p2442_p6 = scmp.lt.u32.totalorder %s3051_s23, %s3157_s12 }
 0x855   : > { %p2443_p4 = scmp.lt.u32.totalorder %s2441_s27, %s2437_s4  ;;  %p2445_p0 = scmp.lt.u32.totalorder %s2437_s4, %s3051_s23 }
 0x856   : > { %p2439_p3 = pnand %p2438_p8, %p3156_p13 }
 0x857   : > { %p2444_p9 = por %p2443_p4, %p2442_p6 }
 0x858   : > { %p2440_p12 = pneg %p2439_p3 }
 0x859   : > { %p2446_p7 = por %p2445_p0, %p2444_p9 }
 0x85b   : > { %p2447_p11 = pnand %p2446_p7, %p2440_p12 }
 0x85d   : > { %2450 = shalt.err (!%p2447_p11)
}
 0x85e   : > { %2102 = dma.vmem_to_hbm [thread:$0]  (%p3156_p13), %s3053_s7, 128, %s3051_s23, %s1629_s20  }
 0x85f PF: > { %s1677_s13 = sand.u32 1, %s2505_s17   ;;  %p3158_p2 = scmp.ne.s32.totalorder %s3142_s25, 0 }
 0x860   : > { %p3159_p10 = scmp.ge.s32.totalorder %s2525_s22, 2  ;;  %s1678_s29 = scalar_lea.sflag [#allocation5], %s1677_s13 }
 0x862   : > { %p2127_p1 = pnand %p3159_p10, %p3158_p2 }
 0x864   : > { %2496 = dma.done.wait (!%p2127_p1), %s1678_s29, 128  }
 0x865   : > { %2498 = vsyncadd (!%p2127_p1), %s1678_s29, 4294967168  ;;  %s1687_s10 = scalar_lea.sflag [#allocation16], %s1677_s13 }
 0x866   : > { %2500 = dma.done.wait (!%p2127_p1), %s1687_s10, 512  }
 0x867   : > { %2502 = vsyncadd (!%p2127_p1), %s1687_s10, 4294966784  ;;  %s36_s22 = sadd.s32 1, %s2525_s22   ;;  %s3160_s11 = sld [smem:[#allocation25_spill]] }
 0x868   : > { %p33_p5 = scmp.ge.s32.totalorder %s36_s22, 4   ;;  %s3161_s17 = smov %s2509_s18 }
 0x869   : > { %s3162_s18 = smov %s2513_s19  ;;  %s3163_s19 = smov %s2791_s16 }
 0x86a   : > { %s3164_s20 = smov %s2521_s21  ;;  %35 = sbr.rel (!%p33_p5) target bundleno = 21 (0x15), region = 175 }
 0x86d   : > { %s3165_s21 = smov %s3160_s11 }
 0x871   :  { %1692 = vsyncpa [#allocation4], 1 }
 0x872   :  { %1694 = vsyncpa [#allocation4 + $0x1], 1 }
 0x873   :  { %1695 = vsyncpa [#allocation7], 1 }
 0x874   :  { %1697 = vsyncpa [#allocation7 + $0x1], 1 }
 0x875   :  { %1698 = vsyncpa [#allocation10], 1 }
 0x876   :  { %1699 = vsyncpa [#allocation13], 1 }
 0x877   :  { %1700 = vsyncpa [#allocation5], 1 }
 0x878   :  { %1702 = vsyncpa [#allocation5 + $0x1], 1 }
 0x879   :  { %1703 = vsyncpa [#allocation16], 1 }
 0x87a   :  { %1705 = vsyncpa [#allocation16 + $0x1], 1 }

</bundles_post_ra>
